<compile_context>
chip_gen: v5e
topology: v5e:2x2
jax: 0.10.0
libtpu: 0.0.40
codegen_flags: <defaults>
</compile_context>

<pallas_src>
import jax
import jax.numpy as jnp
from jax.experimental import pallas as pl
from jax.experimental.pallas import tpu as pltpu


def _isomax_nll_kernel(entropic_scale):
    def kernel(logits_ref, targets_ref, nll_ref):
        # (TB, C) tile of logits; upcast so bf16 inputs accumulate in f32.
        z = entropic_scale * logits_ref[...].astype(jnp.float32)
        tgt = targets_ref[...]                                        # (TB, 1) int32

        # Numerically stable log-sum-exp per row.
        m = jnp.max(z, axis=1, keepdims=True)                         # (TB, 1)
        lse = jnp.log(jnp.sum(jnp.exp(z - m), axis=1, keepdims=True)) + m

        # Select the scaled logit at the target class via iota compare + mask.
        cls_idx = jax.lax.broadcasted_iota(jnp.int32, z.shape, 1)     # (TB, C)
        z_at_target = jnp.sum(
            jnp.where(cls_idx == tgt, z, jnp.zeros_like(z)),
            axis=1, keepdims=True,
        )                                                             # (TB, 1)

        nll_ref[...] = lse - z_at_target                              # (TB, 1)

    return kernel


def isomax_loss_second_part(logits, targets, entropic_scale=10.0, block_rows=None):
    """Pallas implementation of IsoMaxLossSecondPart.forward (debug=False)."""
    B, C = logits.shape
    itemsize = jnp.dtype(logits.dtype).itemsize
    sub = 16 if logits.dtype == jnp.bfloat16 else 8  # min sublane tile

    if block_rows is None:
        # One logits tile <= ~8 MiB so 2 pipelined buffers stay inside the
        # 32 MiB scoped-VMEM budget we request below (safe on v5e/v6e/v7x).
        block_rows = (8 * 1024 * 1024) // max(C * itemsize, 1)
        block_rows = min(block_rows, 1024)
    block_rows = max(sub, (block_rows // sub) * sub)
    # No point tiling wider than the (sublane-padded) batch.
    block_rows = min(block_rows, ((B + sub - 1) // sub) * sub)

    num_tiles = pl.cdiv(B, block_rows)
    targets2d = targets.astype(jnp.int32).reshape(B, 1)

    per_sample_nll = pl.pallas_call(
        _isomax_nll_kernel(float(entropic_scale)),
        out_shape=jax.ShapeDtypeStruct((B, 1), jnp.float32),
        grid=(num_tiles,),
        in_specs=[
            pl.BlockSpec((block_rows, C), lambda i: (i, 0)),
            pl.BlockSpec((block_rows, 1), lambda i: (i, 0)),
        ],
        out_specs=pl.BlockSpec((block_rows, 1), lambda i: (i, 0)),
        compiler_params=pltpu.CompilerParams(
            dimension_semantics=("parallel",),     # shards tiles across v7x's 2 TCs
            vmem_limit_bytes=32 * 1024 * 1024,
        ),
    )(logits, targets2d)

    # Final reduce over per-sample NLLs is cheap in XLA; dividing by the true B
    # (not tiles * TB) keeps the mean exact even when B % block_rows != 0.
    return jnp.sum(per_sample_nll) / jnp.float32(B)

    # TODO(synk): the debug=True branch returns ragged numpy arrays of
    # intra/inter logits (boolean masking to variable length) which has no
    # clean fixed-shape Pallas equivalent; only the loss path is implemented.


def _reference_loss(logits, targets, entropic_scale=10.0):
    probs = jax.nn.softmax(entropic_scale * logits.astype(jnp.float32), axis=1)
    return -jnp.mean(jnp.log(probs[jnp.arange(logits.shape[0]), targets]))


if __name__ == "__main__":
    key = jax.random.PRNGKey(0)
    k1, k2, k3, k4 = jax.random.split(key, 4)

    # Small primary test: batch=8, num_classes=16.
    B, C = 8, 16
    logits = jax.random.normal(k1, (B, C), dtype=jnp.float32)
    targets = jax.random.randint(k2, (B,), 0, C, dtype=jnp.int32)

    loss = isomax_loss_second_part(logits, targets, entropic_scale=10.0)
    loss = jax.block_until_ready(loss)
    ref = _reference_loss(logits, targets, entropic_scale=10.0)
    assert jnp.allclose(loss, ref, rtol=1e-5, atol=1e-5), (loss, ref)

    # Exercise multi-tile + ragged last tile: batch=20 with 8-row tiles.
    B2, C2 = 20, 16
    logits2 = jax.random.normal(k3, (B2, C2), dtype=jnp.float32)
    targets2 = jax.random.randint(k4, (B2,), 0, C2, dtype=jnp.int32)

    loss2 = isomax_loss_second_part(logits2, targets2, entropic_scale=10.0,
                                    block_rows=8)
    loss2 = jax.block_until_ready(loss2)
    ref2 = _reference_loss(logits2, targets2, entropic_scale=10.0)
    assert jnp.allclose(loss2, ref2, rtol=1e-5, atol=1e-5), (loss2, ref2)

    print("KERNEL_OK")
</pallas_src>

<mosaic_0001>
module attributes {stable_mosaic.version = 11 : i64} {
  func.func @kernel(%arg0: i32, %arg1: memref<8x16xf32, #tpu.memory_space<vmem>>, %arg2: memref<8x1xi32, #tpu.memory_space<vmem>>, %arg3: memref<8x1xf32, #tpu.memory_space<vmem>>) attributes {dimension_semantics = [#tpu.dimension_semantics<parallel>], iteration_bounds = array<i64: 1>, scalar_prefetch = 0 : i64, scratch_operands = 0 : i64, tpu.core_type = #tpu.core_type<tc>, window_params = [{transform_indices = @transform_0, window_bounds = array<i64: 8, 16>}, {transform_indices = @transform_1, window_bounds = array<i64: 8, 1>}, {transform_indices = @transform_2, window_bounds = array<i64: 8, 1>}]} {
    %c0 = arith.constant 0 : index
    %c0_0 = arith.constant 0 : index
    %0 = vector.load %arg1[%c0, %c0_0] : memref<8x16xf32, #tpu.memory_space<vmem>>, vector<8x16xf32>
    %cst = arith.constant 1.000000e+01 : f32
    %1 = vector.broadcast %cst : f32 to vector<8x16xf32>
    %2 = arith.mulf %1, %0 : vector<8x16xf32>
    %c0_1 = arith.constant 0 : index
    %c0_2 = arith.constant 0 : index
    %3 = vector.load %arg2[%c0_1, %c0_2] : memref<8x1xi32, #tpu.memory_space<vmem>>, vector<8x1xi32>
    %cst_3 = arith.constant dense<0xFF800000> : vector<8xf32>
    %4 = vector.multi_reduction <maximumf>, %2, %cst_3 [1] : vector<8x16xf32> to vector<8xf32>
    %5 = vector.shape_cast %4 : vector<8xf32> to vector<8x1xf32>
    %6 = vector.broadcast %5 : vector<8x1xf32> to vector<8x16xf32>
    %7 = arith.subf %2, %6 : vector<8x16xf32>
    %8 = math.exp %7 : vector<8x16xf32>
    %cst_4 = arith.constant dense<0.000000e+00> : vector<8xf32>
    %9 = vector.multi_reduction <add>, %8, %cst_4 [1] : vector<8x16xf32> to vector<8xf32>
    %10 = vector.shape_cast %9 : vector<8xf32> to vector<8x1xf32>
    %11 = math.log %10 : vector<8x1xf32>
    %12 = arith.addf %11, %5 : vector<8x1xf32>
    %13 = tpu.iota {dimensions = array<i32: 1>} : vector<8x16xi32>
    %14 = vector.broadcast %3 : vector<8x1xi32> to vector<8x16xi32>
    %15 = arith.cmpi eq, %13, %14 : vector<8x16xi32>
    %cst_5 = arith.constant 0.000000e+00 : f32
    %16 = vector.broadcast %cst_5 : f32 to vector<8x16xf32>
    %17 = arith.select %15, %2, %16 : vector<8x16xi1>, vector<8x16xf32>
    %cst_6 = arith.constant dense<0.000000e+00> : vector<8xf32>
    %18 = vector.multi_reduction <add>, %17, %cst_6 [1] : vector<8x16xf32> to vector<8xf32>
    %19 = vector.shape_cast %18 : vector<8xf32> to vector<8x1xf32>
    %20 = arith.subf %12, %19 : vector<8x1xf32>
    %c0_7 = arith.constant 0 : index
    %c0_8 = arith.constant 0 : index
    %21 = vector.load %arg3[%c0_7, %c0_8] : memref<8x1xf32, #tpu.memory_space<vmem>>, vector<8x1xf32>
    tpu.vector_store %arg3[%c0_7, %c0_8], %20 {strides = array<i32>} : memref<8x1xf32, #tpu.memory_space<vmem>>, vector<8x1xf32>,
    return
  }
  func.func @transform_0(%arg0: i32) -> (i32, i32) {
    %c0_i32 = arith.constant 0 : i32
    %c0_i32_0 = arith.constant 0 : i32
    return %arg0, %c0_i32 : i32, i32
  }
  func.func @transform_1(%arg0: i32) -> (i32, i32) {
    %c0_i32 = arith.constant 0 : i32
    %c0_i32_0 = arith.constant 0 : i32
    return %arg0, %c0_i32 : i32, i32
  }
  func.func @transform_2(%arg0: i32) -> (i32, i32) {
    %c0_i32 = arith.constant 0 : i32
    %c0_i32_0 = arith.constant 0 : i32
    return %arg0, %c0_i32 : i32, i32
  }
}

</mosaic_0001>

<bundles_post_ra>
// kernel: tpu_custom_call.1
= control target key start
LH: loop header
LB: loop body
LE: loop exit
PB: predicated region body
PF: predicated region fallthrough
CT: control target
= control target key end

     0   :  { %vm14_vm0 = vcmask 130048   ;;  %v50_v1 = vmov 0   ;;  %v27_v10 = vlaneseq  ;;  %vm38_vm2 = vcmask 7168   ;;  %s78_s0 = inlined_call_operand.vmem [shape: f32[8,16], index: 0, kind: input, shape index: {}]   ;;  %s79_s1 = inlined_call_operand.vmem [shape: s32[8,1], index: 1, kind: input, shape index: {}]   ;;  %s80_s2 = inlined_call_operand.vmem [shape: f32[8,1], index: 2, kind: output, shape index: {}]  }
   0x1   :  { %v11_v0 = vld [vmem:[%s78_s0] sm:$0xff]  ;;  %45 = vset.pattern.permute.xlu0 %v50_v1 }
   0x2   :  { %v12_v2 = vmul.f32 10.0, %v11_v0  ;;  %v13_v4 = vld [vmem:[%s79_s1] sm:$0xff]  ;;  %v28_v11 = vand.u32 127, %v27_v10 }
   0x4   :  { %v15_v3 = vsel %vm14_vm0, %v12_v2, -inf }
   0x5   :  { %16 = vmax.xlane.f32.xlu0 %v15_v3 }
  0x19   :  { %30 = vperm.xlu0 %45, %v13_v4  }
  0x78   :  { %v17_v5 = vpop.xlane.xlu0 %16 }
  0x79   :  { %v18_v6 = vsub.f32 %v12_v2, %v17_v5 }
  0x7b   :  { %v19_v7 = vmul.f32 1.442695, %v18_v6 }
  0x7d   :  { %46 = vpow2.f32 %v19_v7 }
  0x83   :  { %v47_v8 = vpop.eup %46 }
  0x84   :  { %v21_v9 = vsel %vm14_vm0, %v47_v8, 0.0 }
  0x85   :  { %22 = vadd.xlane.f32.xlu1 %v21_v9 }
  0x8b   :  { %v31_v12 = vpop.permute.xlu0 %30 }
  0x8c   :  { %vm32_vm1 = vcmp.eq.s32.totalorder %v28_v11, %v31_v12 }
  0x8d   :  { %v33_v13 = vsel %vm32_vm1, %v12_v2, 0.0 }
  0x8e   :  { %v34_v14 = vsel %vm14_vm0, %v33_v13, 0.0 }
  0x8f   :  { %35 = vadd.xlane.f32.xlu1 %v34_v14 }
  0xf8   :  { %v23_v15 = vpop.xlane.xlu1 %22 }
  0xf9   :  { %48 = vlog2.f32 %v23_v15 }
  0xff   :  { %v49_v16 = vpop.eup %48 }
 0x100   :  { %v25_v17 = vmul.f32 0.6931472, %v49_v16 }
 0x102   :  { %v26_v18 = vadd.f32 %v25_v17, %v17_v5  ;;  %v36_v19 = vpop.xlane.xlu1 %35 }
 0x104   :  { %v37_v20 = vsub.f32 %v26_v18, %v36_v19 }
 0x106   :  { %39 = vst.msk [vmem:[%s80_s2] sm:$0xff] %vm38_vm2, %v37_v20 }

</bundles_post_ra>
